<compile_context>
chip_gen: v5e
topology: v5e:2x2
jax: 0.10.0
libtpu: 0.0.40
codegen_flags: <defaults>
</compile_context>

<pallas_src>
import math

import jax
import jax.numpy as jnp
from jax import lax
from jax.experimental import pallas as pl
from jax.experimental.pallas import tpu as pltpu

_LOG_SQRT_2PI = 0.5 * math.log(2.0 * math.pi)


def _round_up(x, m):
    return ((x + m - 1) // m) * m


# ----------------------------------------------------------------------------
# Kernel: fused actor+critic MLP + Normal sample / summed log-prob.
#   x_ref     : (TB, 2*In)   concat(x_actor, x_critic)
#   noise_ref : (TB, 8)      std-normal noise in lanes 0-3, zeros in 4-7
#   std_ref   : (1, 8)       std in lanes 0-3, zeros in 4-7
#   w1/b1     : (2*In, 128) / (1, 128)   block-diag [w1a | w1c]
#   w2/b2     : (128, 128)  / (1, 128)   block-diag [w2a | w2c]
#   w3/b3     : (128, 8)    / (1, 8)     cols 0-3 actor head, col 4 critic
#                                        head, col 5 of b3 = logp constant
#   out_ref   : (TB, 8)      lanes 0-3 action, 4 value, 5 logprob, 6-7 zero
# ----------------------------------------------------------------------------
def agent_ppo_kernel(x_ref, noise_ref, std_ref,
                     w1_ref, b1_ref, w2_ref, b2_ref, w3_ref, b3_ref,
                     out_ref):
    x = x_ref[...]

    # ---- fused layer 1: lanes 0-63 = actor (tanh), lanes 64-127 = critic (relu)
    z1 = jnp.dot(x, w1_ref[...], preferred_element_type=jnp.float32) + b1_ref[...]
    lane_h = lax.broadcasted_iota(jnp.int32, z1.shape, 1)
    actor_half = lane_h < (z1.shape[1] // 2)
    h1 = jnp.where(actor_half, jnp.tanh(z1), jnp.maximum(z1, 0.0))

    # ---- fused layer 2
    z2 = jnp.dot(h1, w2_ref[...], preferred_element_type=jnp.float32) + b2_ref[...]
    h2 = jnp.where(actor_half, jnp.tanh(z2), jnp.maximum(z2, 0.0))

    # ---- fused heads: lanes 0-3 actor mean, lane 4 value,
    #                   lane 5 = logp constant (folded into b3), 6-7 zero
    z3 = jnp.dot(h2, w3_ref[...], preferred_element_type=jnp.float32) + b3_ref[...]

    # ---- Normal(mean, std): reparameterized sample + summed log-prob
    noise = noise_ref[...]                       # zeros in lanes 4-7
    std = std_ref[...]                           # zeros in lanes 4-7
    logp = -0.5 * jnp.sum(noise * noise, axis=-1, keepdims=True)   # (TB, 1)
    lane_o = lax.broadcasted_iota(jnp.int32, z3.shape, 1)
    out_ref[...] = z3 + std * noise + jnp.where(lane_o == 5, logp, 0.0)


# ----------------------------------------------------------------------------
# Weight packing (block-diagonal actor/critic fusion).
# ----------------------------------------------------------------------------
def pack_params(params):
    w1a = params["w1a"]
    In, H = w1a.shape
    std = params["logstd"]                       # (1, 4), used directly as std
    A = std.shape[1]                             # action dim (4)

    w1 = jnp.zeros((2 * In, 2 * H), jnp.float32)
    w1 = w1.at[:In, :H].set(params["w1a"]).at[In:, H:].set(params["w1c"])
    b1 = jnp.concatenate([params["b1a"], params["b1c"]], axis=-1)

    w2 = jnp.zeros((2 * H, 2 * H), jnp.float32)
    w2 = w2.at[:H, :H].set(params["w2a"]).at[H:, H:].set(params["w2c"])
    b2 = jnp.concatenate([params["b2a"], params["b2c"]], axis=-1)

    # logp = -0.5*sum(noise^2) - sum(log(std)) - A*log(sqrt(2*pi)); fold the
    # data-independent part into lane 5 of the fused layer-3 bias.
    logp_const = -(jnp.sum(jnp.log(std)) + A * _LOG_SQRT_2PI)

    w3 = jnp.zeros((2 * H, 8), jnp.float32)
    w3 = w3.at[:H, 0:A].set(params["w3a"]).at[H:, A:A + 1].set(params["w3c"])
    b3 = jnp.zeros((1, 8), jnp.float32)
    b3 = b3.at[0, 0:A].set(params["b3a"][0])
    b3 = b3.at[0, A].set(params["b3c"][0, 0])
    b3 = b3.at[0, A + 1].set(logp_const)

    std_pad = jnp.zeros((1, 8), jnp.float32).at[0, 0:A].set(std[0])
    return w1, b1, w2, b2, w3, b3, std_pad


# ----------------------------------------------------------------------------
# Wrapper: grid over the batch, outputs sliced from the packed slab.
# ----------------------------------------------------------------------------
def agent_ppo_forward(x_actor, x_critic, noise, params, *, block_batch=512):
    """Full Agent_PPO forward in a single Pallas kernel.

    Returns (action, log_prob, entropy, value) matching the PyTorch module
    with `action=None` (sampled via the provided standard-normal noise).
    """
    B, In = x_actor.shape
    A = noise.shape[1]

    TB = min(block_batch, _round_up(B, 8))       # batch tile (multiple of 8)
    Bp = _round_up(B, TB)                        # padded batch
    H2 = 2 * params["w1a"].shape[1]              # fused hidden width (128)

    w1, b1, w2, b2, w3, b3, std_pad = pack_params(params)

    x = jnp.concatenate([x_actor, x_critic], axis=-1)          # (B, 2*In)
    if Bp != B:
        x = jnp.pad(x, ((0, Bp - B), (0, 0)))
    noise_pad = jnp.zeros((Bp, 8), jnp.float32).at[:B, 0:A].set(noise)

    grid = (Bp // TB,)
    flops = 2 * Bp * (2 * In * H2 + H2 * H2 + H2 * 8)
    bytes_accessed = 4 * (Bp * (2 * In + 8 + 8)
                          + 2 * In * H2 + H2 * H2 + H2 * 8 + 2 * H2 + 16)

    out = pl.pallas_call(
        agent_ppo_kernel,
        grid=grid,
        in_specs=[
            pl.BlockSpec((TB, 2 * In), lambda i: (i, 0)),     # x (tiled)
            pl.BlockSpec((TB, 8), lambda i: (i, 0)),          # noise (tiled)
            pl.BlockSpec((1, 8), lambda i: (0, 0)),           # std (resident)
            pl.BlockSpec((2 * In, H2), lambda i: (0, 0)),     # w1
            pl.BlockSpec((1, H2), lambda i: (0, 0)),          # b1
            pl.BlockSpec((H2, H2), lambda i: (0, 0)),         # w2
            pl.BlockSpec((1, H2), lambda i: (0, 0)),          # b2
            pl.BlockSpec((H2, 8), lambda i: (0, 0)),          # w3
            pl.BlockSpec((1, 8), lambda i: (0, 0)),           # b3
        ],
        out_specs=pl.BlockSpec((TB, 8), lambda i: (i, 0)),
        out_shape=jax.ShapeDtypeStruct((Bp, 8), jnp.float32),
        compiler_params=pltpu.CompilerParams(
            dimension_semantics=("parallel",),       # dual-TC sharding on v7x
            vmem_limit_bytes=32 * 1024 * 1024,       # fits v7x 64 MiB VMEM
        ),
        cost_estimate=pl.CostEstimate(
            flops=int(flops),
            transcendentals=int(Bp * 2 * H2),
            bytes_accessed=int(bytes_accessed),
        ),
    )(x, noise_pad, std_pad, w1, b1, w2, b2, w3, b3)

    action = out[:B, 0:A]
    value = out[:B, A:A + 1]
    logprob = out[:B, A + 1]
    # Entropy is data-independent (constant per row) -> computed in the wrapper.
    std = params["logstd"]
    entropy = jnp.broadcast_to(jnp.sum(0.5 + _LOG_SQRT_2PI + jnp.log(std)), (B,))
    return action, logprob, entropy, value


# ----------------------------------------------------------------------------
# Parameter init (PyTorch-style uniform +-1/sqrt(fan_in)); weights stored
# pre-transposed as (in_features, out_features), biases as (1, out).
# ----------------------------------------------------------------------------
def init_params(key, input_size=10, hidden_size=64):
    def linear(k, fan_in, fan_out):
        kw, kb = jax.random.split(k)
        bound = 1.0 / math.sqrt(fan_in)
        w = jax.random.uniform(kw, (fan_in, fan_out), jnp.float32, -bound, bound)
        b = jax.random.uniform(kb, (1, fan_out), jnp.float32, -bound, bound)
        return w, b

    keys = jax.random.split(key, 6)
    w1a, b1a = linear(keys[0], input_size, hidden_size)
    w2a, b2a = linear(keys[1], hidden_size, hidden_size)
    w3a, b3a = linear(keys[2], hidden_size, 4)
    w1c, b1c = linear(keys[3], input_size, hidden_size)
    w2c, b2c = linear(keys[4], hidden_size, hidden_size)
    w3c, b3c = linear(keys[5], hidden_size, 1)
    logstd = jnp.ones((1, 4), jnp.float32) * 0.1  # used directly as std
    return dict(
        w1a=w1a, b1a=b1a, w2a=w2a, b2a=b2a, w3a=w3a, b3a=b3a,
        w1c=w1c, b1c=b1c, w2c=w2c, b2c=b2c, w3c=w3c, b3c=b3c,
        logstd=logstd,
    )


def reference_forward(x_actor, x_critic, noise, p):
    """Pure-JAX reference for correctness checking."""
    h = jnp.tanh(x_actor @ p["w1a"] + p["b1a"])
    h = jnp.tanh(h @ p["w2a"] + p["b2a"])
    mean = h @ p["w3a"] + p["b3a"]
    std = p["logstd"]
    action = mean + std * noise
    var = std * std
    logp = (-((action - mean) ** 2) / (2 * var) - jnp.log(std) - _LOG_SQRT_2PI).sum(-1)
    ent = (0.5 + _LOG_SQRT_2PI + jnp.log(std)).sum(-1) * jnp.ones(x_actor.shape[0])
    hc = jnp.maximum(x_critic @ p["w1c"] + p["b1c"], 0.0)
    hc = jnp.maximum(hc @ p["w2c"] + p["b2c"], 0.0)
    value = hc @ p["w3c"] + p["b3c"]
    return action, logp, ent, value


if __name__ == "__main__":
    key = jax.random.PRNGKey(0)
    k_params, k_xa, k_xc, k_noise = jax.random.split(key, 4)

    # Small shapes; B non-multiple of the tile -> exercises padding + grid>1.
    B, INPUT, HIDDEN = 100, 10, 64
    params = init_params(k_params, input_size=INPUT, hidden_size=HIDDEN)

    x_actor = jax.random.normal(k_xa, (B, INPUT), jnp.float32)
    x_critic = jax.random.normal(k_xc, (B, INPUT), jnp.float32)
    noise = jax.random.normal(k_noise, (B, 4), jnp.float32)

    action, logprob, entropy, value = jax.block_until_ready(
        agent_ppo_forward(x_actor, x_critic, noise, params, block_batch=64)
    )

    # sanity-check against the pure-JAX reference (tolerances allow for the
    # MXU's default bf16-pass f32 matmul vs XLA's dot rounding differences).
    ra, rl, re, rv = reference_forward(x_actor, x_critic, noise, params)
    assert jnp.allclose(action, ra, atol=2e-2, rtol=1e-2), float(jnp.abs(action - ra).max())
    assert jnp.allclose(logprob, rl, atol=2e-2, rtol=1e-2), float(jnp.abs(logprob - rl).max())
    assert jnp.allclose(entropy, re, atol=1e-4)
    assert jnp.allclose(value, rv, atol=2e-2, rtol=1e-2), float(jnp.abs(value - rv).max())
    assert action.shape == (B, 4) and logprob.shape == (B,)
    assert entropy.shape == (B,) and value.shape == (B, 1)

    print("KERNEL_OK")
</pallas_src>

<mosaic_0001>
module attributes {stable_mosaic.version = 11 : i64} {
  func.func @agent_ppo_kernel(%arg0: i32, %arg1: memref<64x20xf32, #tpu.memory_space<vmem>>, %arg2: memref<64x8xf32, #tpu.memory_space<vmem>>, %arg3: memref<1x8xf32, #tpu.memory_space<vmem>>, %arg4: memref<20x128xf32, #tpu.memory_space<vmem>>, %arg5: memref<1x128xf32, #tpu.memory_space<vmem>>, %arg6: memref<128x128xf32, #tpu.memory_space<vmem>>, %arg7: memref<1x128xf32, #tpu.memory_space<vmem>>, %arg8: memref<128x8xf32, #tpu.memory_space<vmem>>, %arg9: memref<1x8xf32, #tpu.memory_space<vmem>>, %arg10: memref<64x8xf32, #tpu.memory_space<vmem>>) attributes {dimension_semantics = [#tpu.dimension_semantics<parallel>], iteration_bounds = array<i64: 2>, scalar_prefetch = 0 : i64, scratch_operands = 0 : i64, tpu.core_type = #tpu.core_type<tc>, window_params = [{transform_indices = @transform_0, window_bounds = array<i64: 64, 20>}, {transform_indices = @transform_1, window_bounds = array<i64: 64, 8>}, {pipeline_mode = #tpu.pipeline_mode<synchronous>, transform_indices = @transform_2, window_bounds = array<i64: 1, 8>}, {pipeline_mode = #tpu.pipeline_mode<synchronous>, transform_indices = @transform_3, window_bounds = array<i64: 20, 128>}, {pipeline_mode = #tpu.pipeline_mode<synchronous>, transform_indices = @transform_4, window_bounds = array<i64: 1, 128>}, {pipeline_mode = #tpu.pipeline_mode<synchronous>, transform_indices = @transform_5, window_bounds = array<i64: 128, 128>}, {pipeline_mode = #tpu.pipeline_mode<synchronous>, transform_indices = @transform_6, window_bounds = array<i64: 1, 128>}, {pipeline_mode = #tpu.pipeline_mode<synchronous>, transform_indices = @transform_7, window_bounds = array<i64: 128, 8>}, {pipeline_mode = #tpu.pipeline_mode<synchronous>, transform_indices = @transform_8, window_bounds = array<i64: 1, 8>}, {transform_indices = @transform_9, window_bounds = array<i64: 64, 8>}]} {
    %c0 = arith.constant 0 : index
    %c0_0 = arith.constant 0 : index
    %0 = vector.load %arg1[%c0, %c0_0] : memref<64x20xf32, #tpu.memory_space<vmem>>, vector<64x20xf32>
    %c0_1 = arith.constant 0 : index
    %c0_2 = arith.constant 0 : index
    %1 = vector.load %arg4[%c0_1, %c0_2] : memref<20x128xf32, #tpu.memory_space<vmem>>, vector<20x128xf32>
    %cst = arith.constant dense<0.000000e+00> : vector<64x128xf32>
    %2 = tpu.matmul %0, %1, %cst {dimension_numbers = #tpu.dot_dimension_numbers<[1], [0], [0], [1], [0, 0, 1, 1], [], []>} : vector<64x20xf32>, vector<20x128xf32>, vector<64x128xf32> -> vector<64x128xf32>
    %c0_3 = arith.constant 0 : index
    %c0_4 = arith.constant 0 : index
    %3 = vector.load %arg5[%c0_3, %c0_4] : memref<1x128xf32, #tpu.memory_space<vmem>>, vector<1x128xf32>
    %4 = vector.broadcast %3 : vector<1x128xf32> to vector<64x128xf32>
    %5 = arith.addf %2, %4 : vector<64x128xf32>
    %6 = tpu.iota {dimensions = array<i32: 1>} : vector<64x128xi32>
    %c64_i32 = arith.constant 64 : i32
    %7 = vector.broadcast %c64_i32 : i32 to vector<64x128xi32>
    %8 = arith.cmpi slt, %6, %7 : vector<64x128xi32>
    %9 = math.tanh %5 : vector<64x128xf32>
    %cst_5 = arith.constant 0.000000e+00 : f32
    %10 = vector.broadcast %cst_5 : f32 to vector<64x128xf32>
    %11 = arith.maximumf %5, %10 : vector<64x128xf32>
    %12 = arith.select %8, %9, %11 : vector<64x128xi1>, vector<64x128xf32>
    %c0_6 = arith.constant 0 : index
    %c0_7 = arith.constant 0 : index
    %13 = vector.load %arg6[%c0_6, %c0_7] : memref<128x128xf32, #tpu.memory_space<vmem>>, vector<128x128xf32>
    %cst_8 = arith.constant dense<0.000000e+00> : vector<64x128xf32>
    %14 = tpu.matmul %12, %13, %cst_8 {dimension_numbers = #tpu.dot_dimension_numbers<[1], [0], [0], [1], [0, 0, 1, 1], [], []>} : vector<64x128xf32>, vector<128x128xf32>, vector<64x128xf32> -> vector<64x128xf32>
    %c0_9 = arith.constant 0 : index
    %c0_10 = arith.constant 0 : index
    %15 = vector.load %arg7[%c0_9, %c0_10] : memref<1x128xf32, #tpu.memory_space<vmem>>, vector<1x128xf32>
    %16 = vector.broadcast %15 : vector<1x128xf32> to vector<64x128xf32>
    %17 = arith.addf %14, %16 : vector<64x128xf32>
    %18 = math.tanh %17 : vector<64x128xf32>
    %cst_11 = arith.constant 0.000000e+00 : f32
    %19 = vector.broadcast %cst_11 : f32 to vector<64x128xf32>
    %20 = arith.maximumf %17, %19 : vector<64x128xf32>
    %21 = arith.select %8, %18, %20 : vector<64x128xi1>, vector<64x128xf32>
    %c0_12 = arith.constant 0 : index
    %c0_13 = arith.constant 0 : index
    %22 = vector.load %arg8[%c0_12, %c0_13] : memref<128x8xf32, #tpu.memory_space<vmem>>, vector<128x8xf32>
    %cst_14 = arith.constant dense<0.000000e+00> : vector<64x8xf32>
    %23 = tpu.matmul %21, %22, %cst_14 {dimension_numbers = #tpu.dot_dimension_numbers<[1], [0], [0], [1], [0, 0, 1, 1], [], []>} : vector<64x128xf32>, vector<128x8xf32>, vector<64x8xf32> -> vector<64x8xf32>
    %c0_15 = arith.constant 0 : index
    %c0_16 = arith.constant 0 : index
    %24 = vector.load %arg9[%c0_15, %c0_16] : memref<1x8xf32, #tpu.memory_space<vmem>>, vector<1x8xf32>
    %25 = vector.broadcast %24 : vector<1x8xf32> to vector<64x8xf32>
    %26 = arith.addf %23, %25 : vector<64x8xf32>
    %c0_17 = arith.constant 0 : index
    %c0_18 = arith.constant 0 : index
    %27 = vector.load %arg2[%c0_17, %c0_18] : memref<64x8xf32, #tpu.memory_space<vmem>>, vector<64x8xf32>
    %c0_19 = arith.constant 0 : index
    %c0_20 = arith.constant 0 : index
    %28 = vector.load %arg3[%c0_19, %c0_20] : memref<1x8xf32, #tpu.memory_space<vmem>>, vector<1x8xf32>
    %29 = arith.mulf %27, %27 : vector<64x8xf32>
    %cst_21 = arith.constant dense<0.000000e+00> : vector<64xf32>
    %30 = vector.multi_reduction <add>, %29, %cst_21 [1] : vector<64x8xf32> to vector<64xf32>
    %31 = vector.shape_cast %30 : vector<64xf32> to vector<64x1xf32>
    %cst_22 = arith.constant -5.000000e-01 : f32
    %32 = vector.broadcast %cst_22 : f32 to vector<64x1xf32>
    %33 = arith.mulf %32, %31 : vector<64x1xf32>
    %34 = tpu.iota {dimensions = array<i32: 1>} : vector<64x8xi32>
    %35 = vector.broadcast %28 : vector<1x8xf32> to vector<64x8xf32>
    %36 = arith.mulf %35, %27 : vector<64x8xf32>
    %37 = arith.addf %26, %36 : vector<64x8xf32>
    %c5_i32 = arith.constant 5 : i32
    %38 = vector.broadcast %c5_i32 : i32 to vector<64x8xi32>
    %39 = arith.cmpi eq, %34, %38 : vector<64x8xi32>
    %cst_23 = arith.constant 0.000000e+00 : f32
    %40 = vector.shape_cast %33 : vector<64x1xf32> to vector<64x1xf32>
    %41 = vector.broadcast %40 : vector<64x1xf32> to vector<64x8xf32>
    %42 = vector.broadcast %cst_23 : f32 to vector<64x8xf32>
    %43 = arith.select %39, %41, %42 : vector<64x8xi1>, vector<64x8xf32>
    %44 = arith.addf %37, %43 : vector<64x8xf32>
    %c0_24 = arith.constant 0 : index
    %c0_25 = arith.constant 0 : index
    %45 = vector.load %arg10[%c0_24, %c0_25] : memref<64x8xf32, #tpu.memory_space<vmem>>, vector<64x8xf32>
    tpu.vector_store %arg10[%c0_24, %c0_25], %44 {strides = array<i32>} : memref<64x8xf32, #tpu.memory_space<vmem>>, vector<64x8xf32>,
    return
  }
  func.func @transform_0(%arg0: i32) -> (i32, i32) {
    %c0_i32 = arith.constant 0 : i32
    %c0_i32_0 = arith.constant 0 : i32
    return %arg0, %c0_i32 : i32, i32
  }
  func.func @transform_1(%arg0: i32) -> (i32, i32) {
    %c0_i32 = arith.constant 0 : i32
    %c0_i32_0 = arith.constant 0 : i32
    return %arg0, %c0_i32 : i32, i32
  }
  func.func @transform_2(%arg0: i32) -> (i32, i32) {
    %c0_i32 = arith.constant 0 : i32
    %c0_i32_0 = arith.constant 0 : i32
    %c0_i32_1 = arith.constant 0 : i32
    return %c0_i32, %c0_i32_0 : i32, i32
  }
  func.func @transform_3(%arg0: i32) -> (i32, i32) {
    %c0_i32 = arith.constant 0 : i32
    %c0_i32_0 = arith.constant 0 : i32
    %c0_i32_1 = arith.constant 0 : i32
    return %c0_i32, %c0_i32_0 : i32, i32
  }
  func.func @transform_4(%arg0: i32) -> (i32, i32) {
    %c0_i32 = arith.constant 0 : i32
    %c0_i32_0 = arith.constant 0 : i32
    %c0_i32_1 = arith.constant 0 : i32
    return %c0_i32, %c0_i32_0 : i32, i32
  }
  func.func @transform_5(%arg0: i32) -> (i32, i32) {
    %c0_i32 = arith.constant 0 : i32
    %c0_i32_0 = arith.constant 0 : i32
    %c0_i32_1 = arith.constant 0 : i32
    return %c0_i32, %c0_i32_0 : i32, i32
  }
  func.func @transform_6(%arg0: i32) -> (i32, i32) {
    %c0_i32 = arith.constant 0 : i32
    %c0_i32_0 = arith.constant 0 : i32
    %c0_i32_1 = arith.constant 0 : i32
    return %c0_i32, %c0_i32_0 : i32, i32
  }
  func.func @transform_7(%arg0: i32) -> (i32, i32) {
    %c0_i32 = arith.constant 0 : i32
    %c0_i32_0 = arith.constant 0 : i32
    %c0_i32_1 = arith.constant 0 : i32
    return %c0_i32, %c0_i32_0 : i32, i32
  }
  func.func @transform_8(%arg0: i32) -> (i32, i32) {
    %c0_i32 = arith.constant 0 : i32
    %c0_i32_0 = arith.constant 0 : i32
    %c0_i32_1 = arith.constant 0 : i32
    return %c0_i32, %c0_i32_0 : i32, i32
  }
  func.func @transform_9(%arg0: i32) -> (i32, i32) {
    %c0_i32 = arith.constant 0 : i32
    %c0_i32_0 = arith.constant 0 : i32
    return %arg0, %c0_i32 : i32, i32
  }
}

</mosaic_0001>

<bundles_post_ra>
// kernel: tpu_custom_call.1
= control target key start
LH: loop header
LB: loop body
LE: loop exit
PB: predicated region body
PF: predicated region fallthrough
CT: control target
= control target key end

     0   :  { %s934_s30 = smov 0   ;;  %s1262_s0 = inlined_call_operand.vmem [shape: f32[128,20], index: 0, kind: input, shape index: {}]   ;;  %s1263_s1 = inlined_call_operand.vmem [shape: f32[128,8], index: 1, kind: input, shape index: {}]   ;;  %s1264_s2 = inlined_call_operand.vmem [shape: f32[1,8], index: 2, kind: input, shape index: {}]   ;;  %s1265_s3 = inlined_call_operand.vmem [shape: f32[20,128], index: 3, kind: input, shape index: {}]   ;;  %s1266_s4 = inlined_call_operand.vmem [shape: f32[1,128], index: 4, kind: input, shape index: {}]   ;;  %s1267_s5 = inlined_call_operand.vmem [shape: f32[128,128], index: 5, kind: input, shape index: {}]   ;;  %s1268_s6 = inlined_call_operand.vmem [shape: f32[1,128], index: 6, kind: input, shape index: {}]   ;;  %s1269_s7 = inlined_call_operand.vmem [shape: f32[128,8], index: 7, kind: input, shape index: {}]   ;;  %s1270_s8 = inlined_call_operand.vmem [shape: f32[1,8], index: 8, kind: input, shape index: {}]   ;;  %s1271_s9 = inlined_call_operand.vmem [shape: f32[128,8], index: 9, kind: output, shape index: {}]  }
   0x1 LB: > { %s778_s10 = sadd.s32 4294967295, %s882_s30   ;;  %p782_p0 = scmp.ge.s32.totalorder %s882_s30, 1  ;;  %s882_s30 = sphi %s934_s30, %s19_s30  }
   0x2   : > { %p299_p1 = scmp.lt.s32.totalorder %s882_s30, 3 }
   0x4   : > { %p300_p2 = pnand %p782_p0, %p299_p1 }
   0x5   : > { %s783_s15 = sshll.u32 (!%p300_p2), %s778_s10, 3 }
   0x6   : > { %303 = sbr.rel (%p300_p2) target bundleno = 490 (0x1ea), region = 56  ;;  %p341_p3 = scmp.lt.s32.totalorder (!%p300_p2), %s783_s15, 15 }
   0xb   : > { %v368_v0 = vld [vmem:[%s1265_s3 + $0x10] sm:$0xf]  ;;  %vm398_vm0 = vcmask 1043456   ;;  %v367_v1 = vld [vmem:[%s1265_s3 + $0x8] sm:$0xff]  ;;  %v366_v2 = vld [vmem:[%s1265_s3] sm:$0xff]  ;;  %s1273_s15 = smov (!%p341_p3, %s783_s15), 15  ;;  %v443_v28 = vlaneseq }
   0xc   : > { %789 = vmatpush.msk.msra.mxu0 %vm398_vm0, %v368_v0  ;;  %s951_s18 = sshll.u32 %s1273_s15, 3  ;;  %vm373_vm1 = vcmask 162816   ;;  %v485_v7 = vld [vmem:[%s1267_s5 + $0x78] sm:$0xff]  ;;  %v484_v8 = vld [vmem:[%s1267_s5 + $0x70] sm:$0xff]  ;;  %v483_v9 = vld [vmem:[%s1267_s5 + $0x68] sm:$0xff]  ;;  %vm633_vm3 = vcmask 64512  }
   0xd   : > { %s957_s21 = scalar_lea.vmem %s1262_s0, %s951_s18  ;;  %490 = vmatpush.msra.mxu1 %v485_v7  ;;  %800 = vmatpush.msra.mxu3 %v485_v7  ;;  %v482_v10 = vld [vmem:[%s1267_s5 + $0x60] sm:$0xff]  ;;  %v481_v12 = vld [vmem:[%s1267_s5 + $0x58] sm:$0xff]  ;;  %v480_v13 = vld [vmem:[%s1267_s5 + $0x50] sm:$0xff]  ;;  %v1029_v31 = vand.u32 127, %v443_v28  ;;  %s1107_s13 = scalar_lea.vmem %s1263_s1, %s951_s18 }
   0xe   : > { %416 = vmatpush.msra.mxu0 %v367_v1  ;;  %v358_v3 = vld [vmem:[%s957_s21] sm:$0xff]  ;;  %v359_v4 = vld [vmem:[%s957_s21 + $0x8] sm:$0xff]  ;;  %v360_v5 = vld [vmem:[%s957_s21 + $0x10] sm:$0xff]  ;;  %s1206_s24 = scalar_lea.vmem %s1271_s9, %s951_s18 }
   0xf   : > { %v361_v6 = vld [vmem:[%s957_s21 + $0x18] sm:$0xff]  ;;  %491 = vmatpush.msra.mxu1 %v484_v8  ;;  %801 = vmatpush.msra.mxu3 %v484_v8  ;;  %v362_v11 = vld [vmem:[%s957_s21 + $0x20] sm:$0xff]  ;;  %v479_v14 = vld [vmem:[%s1267_s5 + $0x48] sm:$0xff]  ;;  %vm445_vm2 = vcmp.lt.s32.totalorder %v1029_v31, 64  ;;  %vm685_vm4 = vcmp.eq.s32.totalorder %v1029_v31, 5 }
  0x10   : > { %417 = vmatpush.msra.mxu0 %v366_v2  ;;  %v478_v15 = vld [vmem:[%s1267_s5 + $0x40] sm:$0xff]  ;;  %v363_v16 = vld [vmem:[%s957_s21 + $0x28] sm:$0xff]  ;;  %v477_v17 = vld [vmem:[%s1267_s5 + $0x38] sm:$0xff] }
  0x11   : > { %790 = vmatmul.msk.f32.vlgmr.msra.gmra.mxu0 %vm373_vm1, %v358_v3  ;;  %492 = vmatpush.msra.mxu1 %v483_v9  ;;  %v476_v18 = vld [vmem:[%s1267_s5 + $0x30] sm:$0xff]  ;;  %v365_v20 = vld [vmem:[%s957_s21 + $0x38] sm:$0xff]  ;;  %v475_v21 = vld [vmem:[%s1267_s5 + $0x28] sm:$0xff] }
  0x12   : > { %802 = vmatpush.msra.mxu3 %v483_v9  ;;  %v364_v19 = vld [vmem:[%s957_s21 + $0x30] sm:$0xff]  ;;  %v474_v22 = vld [vmem:[%s1267_s5 + $0x20] sm:$0xff]  ;;  %v473_v23 = vld [vmem:[%s1267_s5 + $0x18] sm:$0xff] }
  0x13   : > { %493 = vmatpush.msra.mxu1 %v482_v10  ;;  %v472_v24 = vld [vmem:[%s1267_s5 + $0x10] sm:$0xff]  ;;  %v471_v25 = vld [vmem:[%s1267_s5 + $0x8] sm:$0xff]  ;;  %v470_v26 = vld [vmem:[%s1267_s5] sm:$0xff] }
  0x14   : > { %803 = vmatpush.msra.mxu3 %v482_v10  ;;  %v1026_v27 = vld [vmem:[%s1266_s4] ss:$0 sm:$0xff]  ;;  %v570_v52 = vld [vmem:[%s1269_s7 + $0x78] sm:$0xff]  ;;  %v569_v53 = vld [vmem:[%s1269_s7 + $0x70] sm:$0xff] }
  0x15   : > { %494 = vmatpush.msra.mxu1 %v481_v12  ;;  %575 = vmatpush.msra.mxu2 %v570_v52  ;;  %v568_v54 = vld [vmem:[%s1269_s7 + $0x68] sm:$0xff]  ;;  %v567_v55 = vld [vmem:[%s1269_s7 + $0x60] sm:$0xff]  ;;  %v566_v60 = vld [vmem:[%s1269_s7 + $0x58] sm:$0xff] }
  0x16   : > { %804 = vmatpush.msra.mxu3 %v481_v12  ;;  %v565_v62 = vld [vmem:[%s1269_s7 + $0x50] sm:$0xff]  ;;  %v564_v63 = vld [vmem:[%s1269_s7 + $0x48] sm:$0xff]  ;;  %v563_v0 = vld [vmem:[%s1269_s7 + $0x40] sm:$0xff] }
  0x17   : > { %495 = vmatpush.msra.mxu1 %v480_v13  ;;  %576 = vmatpush.msra.mxu2 %v569_v53  ;;  %v561_v7 = vld [vmem:[%s1269_s7 + $0x30] sm:$0xff] }
  0x18   : > { %805 = vmatpush.msra.mxu3 %v480_v13 }
  0x19   : > { %791 = vmatmul.msk.f32.gmra.mxu0 %vm373_vm1, %v359_v4  ;;  %496 = vmatpush.msra.mxu1 %v479_v14 }
  0x1a   : > { %806 = vmatpush.msra.mxu3 %v479_v14  ;;  %577 = vmatpush.msra.mxu2 %v568_v54 }
  0x1b   : > { %497 = vmatpush.msra.mxu1 %v478_v15 }
  0x1c   : > { %807 = vmatpush.msra.mxu3 %v478_v15  ;;  %578 = vmatpush.msra.mxu2 %v567_v55 }
  0x1d   : > { %498 = vmatpush.msra.mxu1 %v477_v17 }
  0x1e   : > { %808 = vmatpush.msra.mxu3 %v477_v17  ;;  %579 = vmatpush.msra.mxu2 %v566_v60  ;;  %v559_v17 = vld [vmem:[%s1269_s7 + $0x20] sm:$0xff] }
  0x1f   : > { %499 = vmatpush.msra.mxu1 %v476_v18 }
  0x20   : > { %809 = vmatpush.msra.mxu3 %v476_v18  ;;  %580 = vmatpush.msra.mxu2 %v565_v62  ;;  %v558_v18 = vld [vmem:[%s1269_s7 + $0x18] sm:$0xff] }
  0x21   : > { %792 = vmatmul.msk.f32.gmra.mxu0 %vm373_vm1, %v360_v5  ;;  %500 = vmatpush.msra.mxu1 %v475_v21  ;;  %v562_v5 = vld [vmem:[%s1269_s7 + $0x38] sm:$0xff] }
  0x22   : > { %810 = vmatpush.msra.mxu3 %v475_v21  ;;  %581 = vmatpush.msra.mxu2 %v564_v63  ;;  %v555_v21 = vld [vmem:[%s1269_s7] sm:$0xff] }
  0x23   : > { %501 = vmatpush.msra.mxu1 %v474_v22 }
  0x24   : > { %811 = vmatpush.msra.mxu3 %v474_v22  ;;  %582 = vmatpush.msra.mxu2 %v563_v0  ;;  %v1110_v22 = vld [vmem:[%s1107_s13] sm:$0xff] }
  0x25   : > { %502 = vmatpush.msra.mxu1 %v473_v23 }
  0x26   : > { %812 = vmatpush.msra.mxu3 %v473_v23  ;;  %583 = vmatpush.msra.mxu2 %v562_v5  ;;  %v625_v23 = vmul.f32 %v1110_v22, %v1110_v22 }
  0x27   : > { %503 = vmatpush.msra.mxu1 %v472_v24 }
  0x28   : > { %813 = vmatpush.msra.mxu3 %v472_v24  ;;  %584 = vmatpush.msra.mxu2 %v561_v7  ;;  %v634_v24 = vsel %vm633_vm3, %v625_v23, 0.0 }
  0x29   : > { %793 = vmatmul.msk.f32.gmra.mxu0 %vm373_vm1, %v361_v6  ;;  %504 = vmatpush.msra.mxu1 %v471_v25 }
  0x2a   : > { %814 = vmatpush.msra.mxu3 %v471_v25  ;;  %635 = vadd.xlane.f32.xlu0 %v634_v24  ;;  %v1118_v25 = vld [vmem:[%s1268_s6] ss:$0 sm:$0xff] }
  0x2b   : > { %505 = vmatpush.msra.mxu1 %v470_v26 }
  0x2c   : > { %815 = vmatpush.msra.mxu3 %v470_v26 }
  0x2e   : > { %816 = vmatpush.msrb.mxu3 %v570_v52 }
  0x30   : > { %817 = vmatpush.msrb.mxu3 %v569_v53 }
  0x31   : > { %794 = vmatmul.msk.f32.gmra.mxu0 %vm373_vm1, %v362_v11 }
  0x32   : > { %818 = vmatpush.msrb.mxu3 %v568_v54 }
  0x34   : > { %819 = vmatpush.msrb.mxu3 %v567_v55 }
  0x36   : > { %820 = vmatpush.msrb.mxu3 %v566_v60 }
  0x38   : > { %821 = vmatpush.msrb.mxu3 %v565_v62 }
  0x39   : > { %795 = vmatmul.msk.f32.gmra.mxu0 %vm373_vm1, %v363_v16  ;;  %v560_v16 = vld [vmem:[%s1269_s7 + $0x28] sm:$0xff] }
  0x3a   : > { %822 = vmatpush.msrb.mxu3 %v564_v63  ;;  %585 = vmatpush.msra.mxu2 %v560_v16 }
  0x3c   : > { %823 = vmatpush.msrb.mxu3 %v563_v0  ;;  %586 = vmatpush.msra.mxu2 %v559_v17 }
  0x3e   : > { %824 = vmatpush.msrb.mxu3 %v562_v5  ;;  %587 = vmatpush.msra.mxu2 %v558_v18  ;;  %v1168_v5 = vld [vmem:[%s1107_s13 + $0x38] sm:$0xff] }
  0x40   : > { %825 = vmatpush.msrb.mxu3 %v561_v7 }
  0x41   : > { %796 = vmatmul.msk.f32.gmra.mxu0 %vm373_vm1, %v364_v19  ;;  %v557_v19 = vld [vmem:[%s1269_s7 + $0x10] sm:$0xff] }
  0x42   : > { %826 = vmatpush.msrb.mxu3 %v560_v16  ;;  %588 = vmatpush.msra.mxu2 %v557_v19 }
  0x44   : > { %827 = vmatpush.msrb.mxu3 %v559_v17 }
  0x46   : > { %828 = vmatpush.msrb.mxu3 %v558_v18 }
  0x48   : > { %829 = vmatpush.msrb.mxu3 %v557_v19 }
  0x49   : > { %797 = vmatmul.msk.f32.gmra.mxu0 %vm373_vm1, %v365_v20  ;;  %v556_v20 = vld [vmem:[%s1269_s7 + $0x8] sm:$0xff] }
  0x4a   : > { %589 = vmatpush.msra.mxu2 %v556_v20  ;;  %830 = vmatpush.msrb.mxu3 %v556_v20 }
  0x4c   : > { %590 = vmatpush.msra.mxu2 %v555_v21  ;;  %831 = vmatpush.msrb.mxu3 %v555_v21 }
  0x8e   : > { %v419_v29 = vpop.f32.mrf.mxu0 }
  0x8f   : > { %v420_v30 = vadd.f32 %v1026_v27, %v419_v29 }
  0x91   : > { %844 = vtanh.f32 %v420_v30  ;;  %v454_v32 = vmax.f32 %v420_v30, 0.0 }
  0x96   : > { %v422_v33 = vpop.f32.mrf.mxu0 }
  0x97   : > { %v845_v34 = vpop.eup %844  ;;  %v423_v35 = vadd.f32 %v1026_v27, %v422_v33 }
  0x98   : > { %v462_v36 = vsel %vm445_vm2, %v845_v34, %v454_v32  ;;  %v1128_v34 = vld [vmem:[%s1107_s13 + $0x10] sm:$0xff] }
  0x99   : > { %846 = vtanh.f32 %v423_v35  ;;  %506 = vmatmul.f32.vlgmr.msra.gmra.mxu1 %v462_v36  ;;  %v455_v37 = vmax.f32 %v423_v35, 0.0 }
  0x9e   : > { %v425_v38 = vpop.f32.mrf.mxu0 }
  0x9f   : > { %v847_v39 = vpop.eup %846  ;;  %v426_v40 = vadd.f32 %v1026_v27, %v425_v38 }
  0xa0   : > { %v463_v41 = vsel %vm445_vm2, %v847_v39, %v455_v37  ;;  %v627_v37 = vmul.f32 %v1128_v34, %v1128_v34 }
  0xa1   : > { %848 = vtanh.f32 %v426_v40  ;;  %509 = vmatmul.f32.gmra.mxu1 %v463_v41  ;;  %v456_v42 = vmax.f32 %v426_v40, 0.0 }
  0xa2   : > { %v640_v39 = vsel %vm633_vm3, %v627_v37, 0.0 }
  0xa3   : > { %641 = vadd.xlane.f32.xlu1 %v640_v39 }
  0xa6   : > { %v428_v43 = vpop.f32.mrf.mxu0 }
  0xa7   : > { %v849_v44 = vpop.eup %848  ;;  %v429_v45 = vadd.f32 %v1026_v27, %v428_v43 }
  0xa8   : > { %v464_v46 = vsel %vm445_vm2, %v849_v44, %v456_v42  ;;  %v1137_v42 = vld [vmem:[%s1107_s13 + $0x18] sm:$0xff] }
  0xa9   : > { %850 = vtanh.f32 %v429_v45  ;;  %512 = vmatmul.f32.gmra.mxu1 %v464_v46  ;;  %v457_v47 = vmax.f32 %v429_v45, 0.0  ;;  %v628_v45 = vmul.f32 %v1137_v42, %v1137_v42 }
  0xae   : > { %v431_v48 = vpop.f32.mrf.mxu0 }
  0xaf   : > { %v851_v49 = vpop.eup %850  ;;  %v432_v50 = vadd.f32 %v1026_v27, %v431_v48 }
  0xb0   : > { %v465_v51 = vsel %vm445_vm2, %v851_v49, %v457_v47  ;;  %v643_v47 = vsel %vm633_vm3, %v628_v45, 0.0 }
  0xb1   : > { %852 = vtanh.f32 %v432_v50  ;;  %515 = vmatmul.f32.gmra.mxu1 %v465_v51  ;;  %v458_v56 = vmax.f32 %v432_v50, 0.0  ;;  %644 = vadd.xlane.f32.xlu1 %v643_v47  ;;  %v1146_v50 = vld [vmem:[%s1107_s13 + $0x20] sm:$0xff] }
  0xb2   : > { %v629_v53 = vmul.f32 %v1146_v50, %v1146_v50 }
  0xb4   : > { %v646_v55 = vsel %vm633_vm3, %v629_v53, 0.0 }
  0xb5   : > { %647 = vadd.xlane.f32.xlu2 %v646_v55 }
  0xb6   : > { %v434_v57 = vpop.f32.mrf.mxu0 }
  0xb7   : > { %v853_v58 = vpop.eup %852  ;;  %v435_v59 = vadd.f32 %v1026_v27, %v434_v57 }
  0xb8   : > { %v466_v61 = vsel %vm445_vm2, %v853_v58, %v458_v56  ;;  %v1155_v58 = vld [vmem:[%s1107_s13 + $0x28] sm:$0xff] }
  0xb9   : > { %854 = vtanh.f32 %v435_v59  ;;  %518 = vmatmul.f32.gmra.mxu1 %v466_v61  ;;  %v459_v1 = vmax.f32 %v435_v59, 0.0  ;;  %v630_v61 = vmul.f32 %v1155_v58, %v1155_v58 }
  0xbb   : > { %v649_v63 = vsel %vm633_vm3, %v630_v61, 0.0 }
  0xbd   : > { %650 = vadd.xlane.f32.xlu2 %v649_v63 }
  0xbe   : > { %v437_v2 = vpop.f32.mrf.mxu0 }
  0xbf   : > { %v855_v3 = vpop.eup %854  ;;  %v438_v4 = vadd.f32 %v1026_v27, %v437_v2 }
  0xc0   : > { %v467_v6 = vsel %vm445_vm2, %v855_v3, %v459_v1 }
  0xc1   : > { %856 = vtanh.f32 %v438_v4  ;;  %521 = vmatmul.f32.gmra.mxu1 %v467_v6  ;;  %v460_v8 = vmax.f32 %v438_v4, 0.0  ;;  %v1165_v4 = vld [vmem:[%s1107_s13 + $0x30] sm:$0xff] }
  0xc2   : > { %v631_v7 = vmul.f32 %v1165_v4, %v1165_v4 }
  0xc6   : > { %v440_v9 = vpop.f32.mrf.mxu0 }
  0xc7   : > { %v857_v10 = vpop.eup %856  ;;  %v441_v11 = vadd.f32 %v1026_v27, %v440_v9  ;;  %v1121_v27 = vld [vmem:[%s1107_s13 + $0x8] sm:$0xff]  ;;  %v652_v9 = vsel %vm633_vm3, %v631_v7, 0.0 }
  0xc8   : > { %v468_v12 = vsel %vm445_vm2, %v857_v10, %v460_v8  ;;  %v626_v29 = vmul.f32 %v1121_v27, %v1121_v27  ;;  %v632_v8 = vmul.f32 %v1168_v5, %v1168_v5 }
  0xc9   : > { %858 = vtanh.f32 %v441_v11  ;;  %524 = vmatmul.f32.vlgmr.msra.gmra.mxu3 %v468_v12  ;;  %v461_v13 = vmax.f32 %v441_v11, 0.0 }
  0xca   : > { %v637_v30 = vsel %vm633_vm3, %v626_v29, 0.0  ;;  %v655_v10 = vsel %vm633_vm3, %v632_v8, 0.0 }
  0xcb   : > { %638 = vadd.xlane.f32.xlu0 %v637_v30  ;;  %656 = vadd.xlane.f32.xlu1 %v655_v10 }
  0xcf   : > { %v859_v14 = vpop.eup %858 }
  0xd0   : > { %v469_v15 = vsel %vm445_vm2, %v859_v14, %v461_v13 }
  0xd1   : > { %527 = vmatmul.f32.gmra.mxu3 %v469_v15 }
  0xd3   : > { %653 = vadd.xlane.f32.xlu0 %v652_v9 }
 0x116   : > { %v507_v26 = vpop.f32.mrf.mxu1 }
 0x117   : > { %v508_v28 = vadd.f32 %v1118_v25, %v507_v26  ;;  %v636_v26 = vpop.xlane.xlu0 %635 }
 0x118   : > { %v658_v29 = vmul.f32 -0.5, %v636_v26 }
 0x119   : > { %860 = vtanh.f32 %v508_v28  ;;  %v539_v32 = vmax.f32 %v508_v28, 0.0  ;;  %v1189_v28 = vld [vmem:[%s1264_s2] ss:$0 sm:$0xff] }
 0x11a   : > { %v669_v30 = vmul.f32 %v1189_v28, %v1110_v22  ;;  %v670_v22 = vmul.f32 %v1189_v28, %v1121_v27  ;;  %v674_v9 = vmul.f32 %v1189_v28, %v1155_v58 }
 0x11e   : > { %v510_v33 = vpop.f32.mrf.mxu1 }
 0x11f   : > { %v861_v35 = vpop.eup %860  ;;  %v511_v36 = vadd.f32 %v1118_v25, %v510_v33 }
 0x120   : > { %v547_v38 = vsel %vm445_vm2, %v861_v35, %v539_v32  ;;  %v686_v35 = vsel %vm685_vm4, %v658_v29, 0.0 }
 0x121   : > { %862 = vtanh.f32 %v511_v36  ;;  %591 = vmatmul.f32.vlgmr.msra.gmra.mxu2 %v547_v38  ;;  %v540_v40 = vmax.f32 %v511_v36, 0.0 }
 0x126   : > { %v513_v41 = vpop.f32.mrf.mxu1 }
 0x127   : > { %v863_v43 = vpop.eup %862  ;;  %v514_v44 = vadd.f32 %v1118_v25, %v513_v41 }
 0x128   : > { %v548_v46 = vsel %vm445_vm2, %v863_v43, %v540_v40  ;;  %v642_v43 = vpop.xlane.xlu1 %641 }
 0x129   : > { %864 = vtanh.f32 %v514_v44  ;;  %594 = vmatmul.f32.gmra.mxu2 %v548_v46  ;;  %v541_v48 = vmax.f32 %v514_v44, 0.0  ;;  %v660_v47 = vmul.f32 -0.5, %v642_v43 }
 0x12b   : > { %v688_v27 = vsel %vm685_vm4, %v660_v47, 0.0 }
 0x12e   : > { %v516_v49 = vpop.f32.mrf.mxu1 }
 0x12f   : > { %v865_v51 = vpop.eup %864  ;;  %v517_v52 = vadd.f32 %v1118_v25, %v516_v49 }
 0x130   : > { %v549_v54 = vsel %vm445_vm2, %v865_v51, %v541_v48  ;;  %v671_v48 = vmul.f32 %v1189_v28, %v1128_v34  ;;  %v645_v53 = vpop.xlane.xlu1 %644 }
 0x131   : > { %866 = vtanh.f32 %v517_v52  ;;  %597 = vmatmul.f32.gmra.mxu2 %v549_v54  ;;  %v542_v56 = vmax.f32 %v517_v52, 0.0  ;;  %v661_v55 = vmul.f32 -0.5, %v645_v53 }
 0x136   : > { %v519_v57 = vpop.f32.mrf.mxu1 }
 0x137   : > { %v867_v59 = vpop.eup %866  ;;  %v520_v60 = vadd.f32 %v1118_v25, %v519_v57 }
 0x138   : > { %v550_v62 = vsel %vm445_vm2, %v867_v59, %v542_v56  ;;  %v672_v56 = vmul.f32 %v1189_v28, %v1137_v42  ;;  %v648_v59 = vpop.xlane.xlu2 %647 }
 0x139   : > { %868 = vtanh.f32 %v520_v60  ;;  %600 = vmatmul.f32.gmra.mxu2 %v550_v62  ;;  %v543_v0 = vmax.f32 %v520_v60, 0.0  ;;  %v689_v60 = vsel %vm685_vm4, %v661_v55, 0.0  ;;  %v662_v63 = vmul.f32 -0.5, %v648_v59 }
 0x13e   : > { %v522_v1 = vpop.f32.mrf.mxu1  ;;  %v639_v37 = vpop.xlane.xlu0 %638 }
 0x13f   : > { %v869_v2 = vpop.eup %868  ;;  %v523_v3 = vadd.f32 %v1118_v25, %v522_v1  ;;  %v659_v39 = vmul.f32 -0.5, %v639_v37 }
 0x140   : > { %v551_v6 = vsel %vm445_vm2, %v869_v2, %v543_v0  ;;  %v673_v0 = vmul.f32 %v1189_v28, %v1146_v50  ;;  %v690_v2 = vsel %vm685_vm4, %v662_v63, 0.0 }
 0x141   : > { %870 = vtanh.f32 %v523_v3  ;;  %603 = vmatmul.f32.gmra.mxu2 %v551_v6  ;;  %v544_v11 = vmax.f32 %v523_v3, 0.0  ;;  %v687_v44 = vsel %vm685_vm4, %v659_v39, 0.0  ;;  %v651_v6 = vpop.xlane.xlu2 %650 }
 0x142   : > { %v663_v8 = vmul.f32 -0.5, %v651_v6 }
 0x147   : > { %v871_v12 = vpop.eup %870 }
 0x148   : > { %v552_v13 = vsel %vm445_vm2, %v871_v12, %v544_v11  ;;  %v691_v11 = vsel %vm685_vm4, %v663_v8, 0.0 }
 0x149   : > { %606 = vmatmul.f32.gmra.mxu2 %v552_v13 }
 0x14c   : > { %v525_v14 = vpop.f32.mrf.mxu3 }
 0x14d   : > { %v526_v15 = vadd.f32 %v1118_v25, %v525_v14  ;;  %v654_v14 = vpop.xlane.xlu0 %653 }
 0x14f   : > { %872 = vtanh.f32 %v526_v15  ;;  %v545_v16 = vmax.f32 %v526_v15, 0.0  ;;  %v664_v15 = vmul.f32 -0.5, %v654_v14 }
 0x154   : > { %v528_v17 = vpop.f32.mrf.mxu3 }
 0x155   : > { %v873_v18 = vpop.eup %872  ;;  %v529_v19 = vadd.f32 %v1118_v25, %v528_v17  ;;  %v1194_v25 = vld [vmem:[%s1270_s8] ss:$0 sm:$0xff] }
 0x156   : > { %v553_v20 = vsel %vm445_vm2, %v873_v18, %v545_v16  ;;  %v675_v16 = vmul.f32 %v1189_v28, %v1165_v4  ;;  %v692_v18 = vsel %vm685_vm4, %v664_v15, 0.0 }
 0x157   : > { %874 = vtanh.f32 %v529_v19  ;;  %609 = vmatmul.f32.vlgmr.msrb.gmra.mxu3 %v553_v20  ;;  %v546_v21 = vmax.f32 %v529_v19, 0.0  ;;  %v657_v20 = vpop.xlane.xlu1 %656 }
 0x15d   : > { %v875_v23 = vpop.eup %874 }
 0x15e   : > { %v554_v24 = vsel %vm445_vm2, %v875_v23, %v546_v21  ;;  %v665_v23 = vmul.f32 -0.5, %v657_v20 }
 0x15f   : > { %612 = vmatmul.f32.gmra.mxu3 %v554_v24  ;;  %v676_v24 = vmul.f32 %v1189_v28, %v1168_v5 }
 0x160   : > { %v693_v4 = vsel %vm685_vm4, %v665_v23, 0.0 }
 0x1a4   : > { %v592_v32 = vpop.f32.mrf.mxu2 }
 0x1a5   : > { %v593_v33 = vadd.f32 %v1194_v25, %v592_v32 }
 0x1a7   : > { %v677_v36 = vadd.f32 %v669_v30, %v593_v33 }
 0x1a9   : > { %v694_v38 = vadd.f32 %v686_v35, %v677_v36 }
 0x1ab   : > { %702 = vst.msk [vmem:[%s1206_s24] sm:$0xff] %vm633_vm3, %v694_v38 }
 0x1ac   : > { %v595_v40 = vpop.f32.mrf.mxu2 }
 0x1ad   : > { %v596_v41 = vadd.f32 %v1194_v25, %v595_v40 }
 0x1af   : > { %v678_v45 = vadd.f32 %v670_v22, %v596_v41 }
 0x1b1   : > { %v695_v46 = vadd.f32 %v687_v44, %v678_v45 }
 0x1b3   : > { %703 = vst.msk [vmem:[%s1206_s24 + $0x8] sm:$0xff] %vm633_vm3, %v695_v46 }
 0x1b4   : > { %v598_v49 = vpop.f32.mrf.mxu2 }
 0x1b5   : > { %v599_v51 = vadd.f32 %v1194_v25, %v598_v49 }
 0x1b7   : > { %v679_v52 = vadd.f32 %v671_v48, %v599_v51 }
 0x1b9   : > { %v696_v54 = vadd.f32 %v688_v27, %v679_v52 }
 0x1bb   : > { %704 = vst.msk [vmem:[%s1206_s24 + $0x10] sm:$0xff] %vm633_vm3, %v696_v54 }
 0x1bc   : > { %v601_v57 = vpop.f32.mrf.mxu2 }
 0x1bd   : > { %v602_v34 = vadd.f32 %v1194_v25, %v601_v57 }
 0x1bf   : > { %v680_v61 = vadd.f32 %v672_v56, %v602_v34 }
 0x1c1   : > { %v697_v62 = vadd.f32 %v689_v60, %v680_v61 }
 0x1c3   : > { %705 = vst.msk [vmem:[%s1206_s24 + $0x18] sm:$0xff] %vm633_vm3, %v697_v62 }
 0x1c4   : > { %v604_v1 = vpop.f32.mrf.mxu2 }
 0x1c5   : > { %v605_v42 = vadd.f32 %v1194_v25, %v604_v1 }
 0x1c7   : > { %v681_v3 = vadd.f32 %v673_v0, %v605_v42 }
 0x1c9   : > { %v698_v7 = vadd.f32 %v690_v2, %v681_v3 }
 0x1cb   : > { %706 = vst.msk [vmem:[%s1206_s24 + $0x20] sm:$0xff] %vm633_vm3, %v698_v7 }
 0x1cc   : > { %v607_v10 = vpop.f32.mrf.mxu2 }
 0x1cd   : > { %v608_v50 = vadd.f32 %v1194_v25, %v607_v10 }
 0x1cf   : > { %v682_v12 = vadd.f32 %v674_v9, %v608_v50 }
 0x1d1   : > { %v699_v13 = vadd.f32 %v691_v11, %v682_v12 }
 0x1d3   : > { %707 = vst.msk [vmem:[%s1206_s24 + $0x28] sm:$0xff] %vm633_vm3, %v699_v13 }
 0x1da   : > { %v610_v17 = vpop.f32.mrf.mxu3 }
 0x1db   : > { %v611_v58 = vadd.f32 %v1194_v25, %v610_v17 }
 0x1dd   : > { %v683_v19 = vadd.f32 %v675_v16, %v611_v58 }
 0x1df   : > { %v700_v21 = vadd.f32 %v692_v18, %v683_v19 }
 0x1e1   : > { %708 = vst.msk [vmem:[%s1206_s24 + $0x30] sm:$0xff] %vm633_vm3, %v700_v21 }
 0x1e2   : > { %v613_v26 = vpop.f32.mrf.mxu3 }
 0x1e3   : > { %v614_v29 = vadd.f32 %v1194_v25, %v613_v26 }
 0x1e5   : > { %v684_v30 = vadd.f32 %v676_v24, %v614_v29 }
 0x1e7   : > { %v701_v32 = vadd.f32 %v693_v4, %v684_v30 }
 0x1e9   : > { %709 = vst.msk [vmem:[%s1206_s24 + $0x38] sm:$0xff] %vm633_vm3, %v701_v32 }
 0x1ea PF: > { %s19_s30 = sadd.s32 1, %s882_s30  }
 0x1eb   : > { %p16_p4 = scmp.ge.s32.totalorder %s19_s30, 4  }
 0x1ed   :  { %18 = sbr.rel (!%p16_p4) target bundleno = 1 (0x1), region = 89 }

</bundles_post_ra>
